<compile_context>
chip_gen: v5e
topology: v5e:2x2
jax: 0.10.0
libtpu: 0.0.40
codegen_flags: <defaults>
</compile_context>

<pallas_src>
import functools

import jax
import jax.numpy as jnp
from jax.experimental import pallas as pl
from jax.experimental.pallas import tpu as pltpu


def _round_up(a, b):
    return (a + b - 1) // b * b


def _channel_shuffle(x, groups):
    n, c, h, w = x.shape
    assert c % groups == 0
    x = x.reshape(n, groups, c // groups, h, w)
    x = jnp.transpose(x, (0, 2, 1, 3, 4))
    return x.reshape(n, c, h, w)


def _conv_bn_relu_kernel(x_ref, w_ref, b_ref, o_ref, *, taps, lp):
    # x_ref: (1, Cin_p, Sp)      bf16 -- zero-padded image, flattened spatial, one batch
    # w_ref: (KH*KW, Cout_p, Cin_p) bf16 -- BN scale folded into the weights
    # b_ref: (Cout_p, 1)         f32  -- folded conv-bias + BN shift
    # o_ref: (1, Cout_p, Lp)     f32  -- lane-dense output (spatial on the lane axis)
    xv = x_ref[0]                                   # (Cin_p, Sp)
    cout_p = o_ref.shape[1]
    acc = jnp.zeros((cout_p, lp), jnp.float32)
    for t, off in enumerate(taps):                  # static unroll over conv taps
        xs = xv[:, off:off + lp]                    # statically shifted slice (in VMEM)
        acc = acc + jnp.dot(w_ref[t], xs, preferred_element_type=jnp.float32)
    y = jnp.maximum(acc + b_ref[...], 0.0)
    o_ref[0] = y.astype(o_ref.dtype)


def conv_bn_relu(x, w, conv_bias, gamma, beta, running_mean, running_var, *,
                 stride=1, padding=0, dilation=1, eps=1e-5,
                 channel_shuffle_flag=0, shuffle_groups=1):
    """Fused ConvBNReLU forward (eval-mode BN), conv fused as shifted MXU matmuls."""
    if channel_shuffle_flag:
        x = _channel_shuffle(x, shuffle_groups)

    n, cin, h, wdt = x.shape
    cout, cin_w, kh, kw = w.shape
    assert cin_w == cin, "groups != 1 not supported in this kernel"

    hp = h + 2 * padding
    wp = wdt + 2 * padding
    ho = hp - dilation * (kh - 1)          # dense (stride-1) output height
    wo = wp - dilation * (kw - 1)          # dense (stride-1) output width
    assert ho > 0 and wo > 0

    # Fold conv bias + BatchNorm (eval mode) into per-output-channel scale / bias.
    inv_std = jax.lax.rsqrt(running_var.astype(jnp.float32) + eps)
    scale = gamma.astype(jnp.float32) * inv_std                              # (Cout,)
    bias = beta.astype(jnp.float32) + scale * (
        conv_bias.astype(jnp.float32) - running_mean.astype(jnp.float32))    # (Cout,)

    # TPU-friendly padded sizes.
    cin_p = _round_up(cin, 8)
    cout_p = _round_up(cout, 8)
    l = ho * wp                                 # dense outputs laid on the padded-width grid
    lp = _round_up(l, 128)                      # lane-dense output width
    max_off = (kh - 1) * dilation * wp + (kw - 1) * dilation
    sp = _round_up(max(hp * wp, max_off + lp), 128)

    # Activations: NCHW -> pad spatial -> flatten spatial -> pad channels/length, bf16.
    xpad = jnp.pad(x, ((0, 0), (0, 0), (padding, padding), (padding, padding)))
    xf = xpad.reshape(n, cin, hp * wp)
    xf = jnp.pad(xf, ((0, 0), (0, cin_p - cin), (0, sp - hp * wp))).astype(jnp.bfloat16)

    # Weights: BN scale folded in, per-tap (Cout_p, Cin_p), bf16.
    wk = w.astype(jnp.float32) * scale[:, None, None, None]          # (Cout, Cin, KH, KW)
    wk = jnp.transpose(wk, (2, 3, 0, 1)).reshape(kh * kw, cout, cin)
    wk = jnp.pad(wk, ((0, 0), (0, cout_p - cout), (0, cin_p - cin))).astype(jnp.bfloat16)

    bk = jnp.pad(bias, (0, cout_p - cout)).reshape(cout_p, 1)

    taps = tuple(i * dilation * wp + j * dilation for i in range(kh) for j in range(kw))
    kern = functools.partial(_conv_bn_relu_kernel, taps=taps, lp=lp)

    out = pl.pallas_call(
        kern,
        out_shape=jax.ShapeDtypeStruct((n, cout_p, lp), jnp.float32),
        grid=(n,),
        in_specs=[
            pl.BlockSpec((1, cin_p, sp), lambda b: (b, 0, 0)),
            pl.BlockSpec((kh * kw, cout_p, cin_p), lambda b: (0, 0, 0)),
            pl.BlockSpec((cout_p, 1), lambda b: (0, 0)),
        ],
        out_specs=pl.BlockSpec((1, cout_p, lp), lambda b: (b, 0, 0)),
        compiler_params=pltpu.CompilerParams(
            dimension_semantics=("parallel",)),
        cost_estimate=pl.CostEstimate(
            flops=2 * n * kh * kw * cout_p * cin_p * lp,
            transcendentals=0,
            bytes_accessed=2 * n * cin_p * sp + 2 * kh * kw * cout_p * cin_p
                           + 4 * cout_p + 4 * n * cout_p * lp),
    )(xf, wk, bk)

    # Valid dense output is already channel-major: just slice (no transpose).
    y = out[:, :cout, :ho * wp].reshape(n, cout, ho, wp)[:, :, :, :wo]
    if stride > 1:
        y = y[:, :, ::stride, ::stride]
    return y


def _reference(x, w, conv_bias, gamma, beta, mean, var, *, stride, padding, dilation,
               eps, channel_shuffle_flag, shuffle_groups):
    if channel_shuffle_flag:
        x = _channel_shuffle(x, shuffle_groups)
    y = jax.lax.conv_general_dilated(
        x, w, (stride, stride), [(padding, padding), (padding, padding)],
        rhs_dilation=(dilation, dilation),
        dimension_numbers=("NCHW", "OIHW", "NCHW"),
        precision=jax.lax.Precision.HIGHEST)
    y = y + conv_bias[None, :, None, None]
    y = gamma[None, :, None, None] * (y - mean[None, :, None, None]) \
        / jnp.sqrt(var[None, :, None, None] + eps) + beta[None, :, None, None]
    return jnp.maximum(y, 0.0)


if __name__ == "__main__":
    # Small, module-consistent shapes: batch=2, in_channels=4, out_channels=8,
    # spatial 16x16, 3x3 conv, stride 1, padding 1, channel_shuffle with 2 groups.
    N, CIN, H, W = 2, 4, 16, 16
    COUT, KH, KW = 8, 3, 3
    stride, padding, dilation, eps = 1, 1, 1, 1e-5
    shuffle_flag, shuffle_groups = 1, 2

    key = jax.random.PRNGKey(0)
    kx, kw_, kb, kg, kbe, km, kv = jax.random.split(key, 7)
    x = jax.random.normal(kx, (N, CIN, H, W), dtype=jnp.float32)
    w = jax.random.normal(kw_, (COUT, CIN, KH, KW), dtype=jnp.float32) * 0.2
    conv_bias = jax.random.normal(kb, (COUT,), dtype=jnp.float32) * 0.1
    gamma = 1.0 + 0.1 * jax.random.normal(kg, (COUT,), dtype=jnp.float32)
    beta = 0.1 * jax.random.normal(kbe, (COUT,), dtype=jnp.float32)
    running_mean = 0.1 * jax.random.normal(km, (COUT,), dtype=jnp.float32)
    running_var = jnp.abs(jax.random.normal(kv, (COUT,), dtype=jnp.float32)) + 0.5

    out = conv_bn_relu(x, w, conv_bias, gamma, beta, running_mean, running_var,
                       stride=stride, padding=padding, dilation=dilation, eps=eps,
                       channel_shuffle_flag=shuffle_flag, shuffle_groups=shuffle_groups)
    out = jax.block_until_ready(out)

    ref = _reference(x, w, conv_bias, gamma, beta, running_mean, running_var,
                     stride=stride, padding=padding, dilation=dilation, eps=eps,
                     channel_shuffle_flag=shuffle_flag, shuffle_groups=shuffle_groups)
    ref = jax.block_until_ready(ref)

    assert out.shape == (N, COUT, H, W), f"bad shape {out.shape}"
    # bf16 operands with f32 accumulation -> bf16-level matmul tolerance.
    assert jnp.allclose(out, ref, atol=2e-2, rtol=2e-2), "mismatch vs reference"

    print("KERNEL_OK")
</pallas_src>

<mosaic_0001>
module attributes {stable_mosaic.version = 11 : i64} {
  func.func @_conv_bn_relu_kernel(%arg0: i32, %arg1: memref<1x8x512xbf16, #tpu.memory_space<vmem>>, %arg2: memref<9x8x8xbf16, #tpu.memory_space<vmem>>, %arg3: memref<8x1xf32, #tpu.memory_space<vmem>>, %arg4: memref<1x8x384xf32, #tpu.memory_space<vmem>>) attributes {dimension_semantics = [#tpu.dimension_semantics<parallel>], iteration_bounds = array<i64: 2>, scalar_prefetch = 0 : i64, scratch_operands = 0 : i64, tpu.core_type = #tpu.core_type<tc>, window_params = [{transform_indices = @transform_0, window_bounds = array<i64: 1, 8, 512>}, {pipeline_mode = #tpu.pipeline_mode<synchronous>, transform_indices = @transform_1, window_bounds = array<i64: 9, 8, 8>}, {pipeline_mode = #tpu.pipeline_mode<synchronous>, transform_indices = @transform_2, window_bounds = array<i64: 8, 1>}, {transform_indices = @transform_3, window_bounds = array<i64: 1, 8, 384>}]} {
    %c0 = arith.constant 0 : index
    %c0_0 = arith.constant 0 : index
    %c0_1 = arith.constant 0 : index
    %0 = vector.load %arg1[%c0, %c0_0, %c0_1] : memref<1x8x512xbf16, #tpu.memory_space<vmem>>, vector<1x8x512xbf16>
    %1 = vector.shape_cast %0 : vector<1x8x512xbf16> to vector<8x512xbf16>
    %cst = arith.constant 0.000000e+00 : f32
    %2 = vector.broadcast %cst : f32 to vector<8x384xf32>
    %3 = vector.extract_strided_slice %1 {offsets = [0, 0], sizes = [8, 384], strides = [1, 1]} : vector<8x512xbf16> to vector<8x384xbf16>
    %c0_2 = arith.constant 0 : index
    %c0_3 = arith.constant 0 : index
    %c0_4 = arith.constant 0 : index
    %4 = vector.load %arg2[%c0_2, %c0_3, %c0_4] : memref<9x8x8xbf16, #tpu.memory_space<vmem>>, vector<1x8x8xbf16>
    %5 = vector.shape_cast %4 : vector<1x8x8xbf16> to vector<8x8xbf16>
    %cst_5 = arith.constant dense<0.000000e+00> : vector<8x384xf32>
    %6 = tpu.matmul %5, %3, %cst_5 {dimension_numbers = #tpu.dot_dimension_numbers<[1], [0], [0], [1], [0, 0, 1, 1], [], []>} : vector<8x8xbf16>, vector<8x384xbf16>, vector<8x384xf32> -> vector<8x384xf32>
    %7 = arith.addf %2, %6 : vector<8x384xf32>
    %8 = vector.extract_strided_slice %1 {offsets = [0, 1], sizes = [8, 384], strides = [1, 1]} : vector<8x512xbf16> to vector<8x384xbf16>
    %c1 = arith.constant 1 : index
    %c0_6 = arith.constant 0 : index
    %c0_7 = arith.constant 0 : index
    %9 = vector.load %arg2[%c1, %c0_6, %c0_7] : memref<9x8x8xbf16, #tpu.memory_space<vmem>>, vector<1x8x8xbf16>
    %10 = vector.shape_cast %9 : vector<1x8x8xbf16> to vector<8x8xbf16>
    %cst_8 = arith.constant dense<0.000000e+00> : vector<8x384xf32>
    %11 = tpu.matmul %10, %8, %cst_8 {dimension_numbers = #tpu.dot_dimension_numbers<[1], [0], [0], [1], [0, 0, 1, 1], [], []>} : vector<8x8xbf16>, vector<8x384xbf16>, vector<8x384xf32> -> vector<8x384xf32>
    %12 = arith.addf %7, %11 : vector<8x384xf32>
    %13 = vector.extract_strided_slice %1 {offsets = [0, 2], sizes = [8, 384], strides = [1, 1]} : vector<8x512xbf16> to vector<8x384xbf16>
    %c2 = arith.constant 2 : index
    %c0_9 = arith.constant 0 : index
    %c0_10 = arith.constant 0 : index
    %14 = vector.load %arg2[%c2, %c0_9, %c0_10] : memref<9x8x8xbf16, #tpu.memory_space<vmem>>, vector<1x8x8xbf16>
    %15 = vector.shape_cast %14 : vector<1x8x8xbf16> to vector<8x8xbf16>
    %cst_11 = arith.constant dense<0.000000e+00> : vector<8x384xf32>
    %16 = tpu.matmul %15, %13, %cst_11 {dimension_numbers = #tpu.dot_dimension_numbers<[1], [0], [0], [1], [0, 0, 1, 1], [], []>} : vector<8x8xbf16>, vector<8x384xbf16>, vector<8x384xf32> -> vector<8x384xf32>
    %17 = arith.addf %12, %16 : vector<8x384xf32>
    %18 = vector.extract_strided_slice %1 {offsets = [0, 18], sizes = [8, 384], strides = [1, 1]} : vector<8x512xbf16> to vector<8x384xbf16>
    %c3 = arith.constant 3 : index
    %c0_12 = arith.constant 0 : index
    %c0_13 = arith.constant 0 : index
    %19 = vector.load %arg2[%c3, %c0_12, %c0_13] : memref<9x8x8xbf16, #tpu.memory_space<vmem>>, vector<1x8x8xbf16>
    %20 = vector.shape_cast %19 : vector<1x8x8xbf16> to vector<8x8xbf16>
    %cst_14 = arith.constant dense<0.000000e+00> : vector<8x384xf32>
    %21 = tpu.matmul %20, %18, %cst_14 {dimension_numbers = #tpu.dot_dimension_numbers<[1], [0], [0], [1], [0, 0, 1, 1], [], []>} : vector<8x8xbf16>, vector<8x384xbf16>, vector<8x384xf32> -> vector<8x384xf32>
    %22 = arith.addf %17, %21 : vector<8x384xf32>
    %23 = vector.extract_strided_slice %1 {offsets = [0, 19], sizes = [8, 384], strides = [1, 1]} : vector<8x512xbf16> to vector<8x384xbf16>
    %c4 = arith.constant 4 : index
    %c0_15 = arith.constant 0 : index
    %c0_16 = arith.constant 0 : index
    %24 = vector.load %arg2[%c4, %c0_15, %c0_16] : memref<9x8x8xbf16, #tpu.memory_space<vmem>>, vector<1x8x8xbf16>
    %25 = vector.shape_cast %24 : vector<1x8x8xbf16> to vector<8x8xbf16>
    %cst_17 = arith.constant dense<0.000000e+00> : vector<8x384xf32>
    %26 = tpu.matmul %25, %23, %cst_17 {dimension_numbers = #tpu.dot_dimension_numbers<[1], [0], [0], [1], [0, 0, 1, 1], [], []>} : vector<8x8xbf16>, vector<8x384xbf16>, vector<8x384xf32> -> vector<8x384xf32>
    %27 = arith.addf %22, %26 : vector<8x384xf32>
    %28 = vector.extract_strided_slice %1 {offsets = [0, 20], sizes = [8, 384], strides = [1, 1]} : vector<8x512xbf16> to vector<8x384xbf16>
    %c5 = arith.constant 5 : index
    %c0_18 = arith.constant 0 : index
    %c0_19 = arith.constant 0 : index
    %29 = vector.load %arg2[%c5, %c0_18, %c0_19] : memref<9x8x8xbf16, #tpu.memory_space<vmem>>, vector<1x8x8xbf16>
    %30 = vector.shape_cast %29 : vector<1x8x8xbf16> to vector<8x8xbf16>
    %cst_20 = arith.constant dense<0.000000e+00> : vector<8x384xf32>
    %31 = tpu.matmul %30, %28, %cst_20 {dimension_numbers = #tpu.dot_dimension_numbers<[1], [0], [0], [1], [0, 0, 1, 1], [], []>} : vector<8x8xbf16>, vector<8x384xbf16>, vector<8x384xf32> -> vector<8x384xf32>
    %32 = arith.addf %27, %31 : vector<8x384xf32>
    %33 = vector.extract_strided_slice %1 {offsets = [0, 36], sizes = [8, 384], strides = [1, 1]} : vector<8x512xbf16> to vector<8x384xbf16>
    %c6 = arith.constant 6 : index
    %c0_21 = arith.constant 0 : index
    %c0_22 = arith.constant 0 : index
    %34 = vector.load %arg2[%c6, %c0_21, %c0_22] : memref<9x8x8xbf16, #tpu.memory_space<vmem>>, vector<1x8x8xbf16>
    %35 = vector.shape_cast %34 : vector<1x8x8xbf16> to vector<8x8xbf16>
    %cst_23 = arith.constant dense<0.000000e+00> : vector<8x384xf32>
    %36 = tpu.matmul %35, %33, %cst_23 {dimension_numbers = #tpu.dot_dimension_numbers<[1], [0], [0], [1], [0, 0, 1, 1], [], []>} : vector<8x8xbf16>, vector<8x384xbf16>, vector<8x384xf32> -> vector<8x384xf32>
    %37 = arith.addf %32, %36 : vector<8x384xf32>
    %38 = vector.extract_strided_slice %1 {offsets = [0, 37], sizes = [8, 384], strides = [1, 1]} : vector<8x512xbf16> to vector<8x384xbf16>
    %c7 = arith.constant 7 : index
    %c0_24 = arith.constant 0 : index
    %c0_25 = arith.constant 0 : index
    %39 = vector.load %arg2[%c7, %c0_24, %c0_25] : memref<9x8x8xbf16, #tpu.memory_space<vmem>>, vector<1x8x8xbf16>
    %40 = vector.shape_cast %39 : vector<1x8x8xbf16> to vector<8x8xbf16>
    %cst_26 = arith.constant dense<0.000000e+00> : vector<8x384xf32>
    %41 = tpu.matmul %40, %38, %cst_26 {dimension_numbers = #tpu.dot_dimension_numbers<[1], [0], [0], [1], [0, 0, 1, 1], [], []>} : vector<8x8xbf16>, vector<8x384xbf16>, vector<8x384xf32> -> vector<8x384xf32>
    %42 = arith.addf %37, %41 : vector<8x384xf32>
    %43 = vector.extract_strided_slice %1 {offsets = [0, 38], sizes = [8, 384], strides = [1, 1]} : vector<8x512xbf16> to vector<8x384xbf16>
    %c8 = arith.constant 8 : index
    %c0_27 = arith.constant 0 : index
    %c0_28 = arith.constant 0 : index
    %44 = vector.load %arg2[%c8, %c0_27, %c0_28] : memref<9x8x8xbf16, #tpu.memory_space<vmem>>, vector<1x8x8xbf16>
    %45 = vector.shape_cast %44 : vector<1x8x8xbf16> to vector<8x8xbf16>
    %cst_29 = arith.constant dense<0.000000e+00> : vector<8x384xf32>
    %46 = tpu.matmul %45, %43, %cst_29 {dimension_numbers = #tpu.dot_dimension_numbers<[1], [0], [0], [1], [0, 0, 1, 1], [], []>} : vector<8x8xbf16>, vector<8x384xbf16>, vector<8x384xf32> -> vector<8x384xf32>
    %47 = arith.addf %42, %46 : vector<8x384xf32>
    %c0_30 = arith.constant 0 : index
    %c0_31 = arith.constant 0 : index
    %48 = vector.load %arg3[%c0_30, %c0_31] : memref<8x1xf32, #tpu.memory_space<vmem>>, vector<8x1xf32>
    %49 = vector.broadcast %48 : vector<8x1xf32> to vector<8x384xf32>
    %50 = arith.addf %47, %49 : vector<8x384xf32>
    %cst_32 = arith.constant 0.000000e+00 : f32
    %51 = vector.broadcast %cst_32 : f32 to vector<8x384xf32>
    %52 = arith.maximumf %50, %51 : vector<8x384xf32>
    %c0_33 = arith.constant 0 : index
    %c0_34 = arith.constant 0 : index
    %c0_35 = arith.constant 0 : index
    %53 = vector.load %arg4[%c0_33, %c0_34, %c0_35] : memref<1x8x384xf32, #tpu.memory_space<vmem>>, vector<1x8x384xf32>
    %54 = vector.shape_cast %53 : vector<1x8x384xf32> to vector<8x384xf32>
    %55 = vector.shape_cast %52 : vector<8x384xf32> to vector<1x8x384xf32>
    tpu.vector_store %arg4[%c0_33, %c0_34, %c0_35], %55 {strides = array<i32>} : memref<1x8x384xf32, #tpu.memory_space<vmem>>, vector<1x8x384xf32>,
    return
  }
  func.func @transform_0(%arg0: i32) -> (i32, i32, i32) {
    %c0_i32 = arith.constant 0 : i32
    %c0_i32_0 = arith.constant 0 : i32
    %c0_i32_1 = arith.constant 0 : i32
    return %arg0, %c0_i32, %c0_i32_0 : i32, i32, i32
  }
  func.func @transform_1(%arg0: i32) -> (i32, i32, i32) {
    %c0_i32 = arith.constant 0 : i32
    %c0_i32_0 = arith.constant 0 : i32
    %c0_i32_1 = arith.constant 0 : i32
    %c0_i32_2 = arith.constant 0 : i32
    return %c0_i32, %c0_i32_0, %c0_i32_1 : i32, i32, i32
  }
  func.func @transform_2(%arg0: i32) -> (i32, i32) {
    %c0_i32 = arith.constant 0 : i32
    %c0_i32_0 = arith.constant 0 : i32
    %c0_i32_1 = arith.constant 0 : i32
    return %c0_i32, %c0_i32_0 : i32, i32
  }
  func.func @transform_3(%arg0: i32) -> (i32, i32, i32) {
    %c0_i32 = arith.constant 0 : i32
    %c0_i32_0 = arith.constant 0 : i32
    %c0_i32_1 = arith.constant 0 : i32
    return %arg0, %c0_i32, %c0_i32_0 : i32, i32, i32
  }
}

</mosaic_0001>

<bundles_post_ra>
// kernel: tpu_custom_call.1
= control target key start
LH: loop header
LB: loop body
LE: loop exit
PB: predicated region body
PF: predicated region fallthrough
CT: control target
= control target key end

     0   :  { %8 = vsyncpa [#allocation3], 0  ;;  %s1260_s0 = inlined_call_operand.vmem [shape: bf16[2,8,512], index: 0, kind: input, shape index: {}]   ;;  %s1261_s1 = inlined_call_operand.vmem [shape: bf16[9,8,8], index: 1, kind: input, shape index: {}]   ;;  %s1262_s2 = inlined_call_operand.vmem [shape: f32[8,1], index: 2, kind: input, shape index: {}]   ;;  %s1263_s3 = inlined_call_operand.hbm [shape: f32[2,8,384], index: 3, kind: output, shape index: {}]  }
   0x1   :  { %10 = vsyncpa [#allocation3 + $0x1], 0  ;;  %s1058_s12 = smov 0   ;;  %s1060_s13 = smov 0  }
   0x2   :  { %s1062_s14 = smov 0   ;;  %s1064_s15 = smov 0  }
   0x3 LB: > { %s1079_s16 = sadd.s32 4294967295, %s1027_s15   ;;  %s868_s17 = sadd.s32 4294967294, %s1027_s15   ;;  %s1027_s15 = sphi %s1064_s15, %s1269_s15   ;;  %s1023_s14 = sphi %s1062_s14, %s1268_s14   ;;  %s1019_s13 = sphi %s1060_s13, %s1267_s13   ;;  %s1015_s12 = sphi %s1058_s12, %s1266_s12  }
   0x4   : > { %s1083_s18 = sadd.s32 1, %s1027_s15   ;;  %s91_s19 = sadd.s32 1, %s1023_s14 }
   0x5   : > { %s88_s20 = ssub.s32 %s1027_s15, %s1083_s18  ;;  %p101_p0 = scmp.ne.s32.totalorder %s1023_s14, %s1019_s13 }
   0x6   : > { %p89_p1 = scmp.eq.s32.totalorder %s88_s20, 0  ;;  %p102_p2 = scmp.eq.s32.totalorder %s1079_s16, 1 }
   0x7   : > { %p107_p3 = scmp.ne.s32.totalorder %s1019_s13, %s1015_s12  ;;  %p108_p4 = scmp.eq.s32.totalorder %s868_s17, 1 }
   0x8   : > { %s1094_s21 = scalar_select %p89_p1, %s1023_s14, %s91_s19  }
   0x9   : > { %p1096_p5 = por %p102_p2, %p101_p0  ;;  %p1100_p6 = por %p108_p4, %p107_p3 }
   0xa   : > { %p871_p7 = scmp.ge.s32.totalorder %s1027_s15, 1  ;;  %p140_p8 = scmp.lt.s32.totalorder %s1027_s15, 3 }
   0xc   : > { %p141_p9 = pnand %p871_p7, %p140_p8 }
   0xd   : > { %p164_p10 = scmp.lt.s32.totalorder (!%p141_p9), %s1079_s16, 1  ;;  %s1029_s29 = smov (!%p141_p9), 127  }
   0xe   : > { %144 = sbr.rel (%p141_p9) target bundleno = 397 (0x18d), region = 32  ;;  %s1030_s30 = smov (!%p141_p9), 126  }
   0xf   : > { %s1031_s4 = smov (!%p141_p9), 110   ;;  %s1032_s5 = smov (!%p141_p9), 109  }
  0x10   : > { %s1033_s6 = smov (!%p141_p9), 108   ;;  %s1034_s7 = smov (!%p141_p9), 92  }
  0x11   : > { %s1035_s8 = smov (!%p141_p9), 91   ;;  %s1036_s9 = smov (!%p141_p9), 90  }
  0x12   : > { %s161_s17 = sand.u32 (!%p141_p9), 1, %s1019_s13   ;;  %s914_s20 = smul.u32 (!%p141_p9), 24, %s1079_s16 }
  0x13   : > { %s165_s24 = scalar_select %p164_p10, %s1079_s16, 1  ;;  %vm201_vm0 = vcmask 1043456   ;;  %v172_v11 = vld [vmem:[%s1261_s1] sm:$0xf]  ;;  %vm197_vm1 = vcmask 64512   ;;  %vm311_vm2 = vcmask 1031168  }
  0x14   : > { %vm193_vm3 = vcmask 1039360   ;;  %v874_v30 = vld [vmem:[%s1261_s1 + $0x4] sm:$0xf]  ;;  %vm379_vm4 = vcmask 900096   ;;  %v881_v40 = vld [vmem:[%s1261_s1 + $0x8] sm:$0xf]  ;;  %s804_s26 = scalar_lea.hbm %s1263_s3, %s914_s20 }
  0x15   : > { %s912_s25 = sshll.u32 %s165_s24, 4  ;;  %vm447_vm5 = vcmask 891904   ;;  %v885_v53 = vld [vmem:[%s1261_s1 + $0xc] sm:$0xf]  ;;  %vm515_vm6 = vcmask 883712   ;;  %vm583_vm7 = vcmask 752640  }
  0x16   : > { %s168_s28 = scalar_lea.vmem %s1260_s0, %s912_s25  ;;  %vm651_vm8 = vcmask 744448   ;;  %vm719_vm9 = vcmask 736256   ;;  %s913_s19 = smul.u32 24, %s161_s17 }
  0x17   : > { %v171_v0 = vld [vmem:[%s168_s28 + $0x8] sm:$0xff]  ;;  %v170_v1 = vld [vmem:[%s168_s28] sm:$0xff]  ;;  %s808_s16 = sshll.u32 %s804_s26, 4  ;;  %s809_s16 = int_to_ptr.hbm [resolvable:$true] %s808_s16 }
  0x18   : > { %v179_v2 = vunpack.c.l.b16 %v171_v0  ;;  %v177_v3 = vunpack.c.l.b16 %v170_v1  ;;  %v180_v6 = vunpack.c.h.b16 %v171_v0  ;;  %v178_v7 = vunpack.c.h.b16 %v170_v1  ;;  %s163_s27 = scalar_lea.vmem [#allocation2], %s913_s19 }
  0x19   : > { %s806_s28 = sshll.u32 %s163_s27, 4  ;;  %s807_s28 = int_to_ptr.vmem [resolvable:$true] %s806_s28 }
  0x1a   : > { %v1111_v4 = vpack.c.b16 %v179_v2, %v179_v2  ;;  %v181_v5 = vpack.c.b16 %v177_v3, %v177_v3  ;;  %v184_v8 = vpack.c.b16 %v180_v6, %v180_v6  ;;  %v182_v9 = vpack.c.b16 %v178_v7, %v178_v7 }
  0x1c   : > { %189 = vrot.lane.b32.xlu0 %v1111_v4, %s1029_s29  ;;  %185 = vrot.lane.b32.xlu1 %v181_v5, %s1029_s29  ;;  %v254_v10 = vsel %vm201_vm0, %v181_v5, 0  ;;  %v257_v25 = vsel %vm201_vm0, %v182_v9, 0  ;;  %v260_v29 = vsel %vm201_vm0, %v1111_v4, 0 }
  0x1d   : > { %303 = vrot.lane.b32.xlu2 %v181_v5, %s1030_s30  ;;  %269 = vmatpush.bf16.msra.mxu3 %v254_v10 }
  0x20   : > { %878 = vmatmul.msk.bf16.vlgmr.msra.gmra.mxu3 %vm197_vm1, %v172_v11 }
  0x24   : > { %191 = vrot.lane.b32.xlu0 %v184_v8, %s1029_s29  ;;  %187 = vrot.lane.b32.xlu1 %v182_v9, %s1029_s29  ;;  %s793_s29 = scalar_lea.sflag [#allocation3], %s161_s17 }
  0x25   : > { %305 = vrot.lane.b32.xlu2 %v182_v9, %s1030_s30 }
  0x2c   : > { %307 = vrot.lane.b32.xlu0 %v1111_v4, %s1030_s30  ;;  %373 = vrot.lane.b32.xlu1 %v182_v9, %s1031_s4 }
  0x2d   : > { %375 = vrot.lane.b32.xlu2 %v1111_v4, %s1031_s4 }
  0x34   : > { %309 = vrot.lane.b32.xlu0 %v184_v8, %s1030_s30  ;;  %371 = vrot.lane.b32.xlu1 %v181_v5, %s1031_s4  ;;  %s979_s30 = sshra.s32 %s809_s16, 4  ;;  %s980_s30 = int_to_ptr.hbm [resolvable:$true] %s979_s30 }
  0x35   : > { %377 = vrot.lane.b32.xlu2 %v184_v8, %s1031_s4  ;;  %s981_s4 = scalar_lea.hbm %s980_s30, 24  ;;  %p986_p0 = scmp.lt.s32.totalorder %s980_s30, %s1263_s3 }
  0x36   : > { %p982_p11 = scmp.ne.s32.totalorder %s980_s30, %s981_s4 }
  0x38   : > { %p983_p12 = pnand %p982_p11, %p1096_p5 }
  0x3a   : > { %p984_p13 = pneg %p983_p12 }
  0x3c   : > { %443 = vrot.lane.b32.xlu0 %v1111_v4, %s1032_s5  ;;  %445 = vrot.lane.b32.xlu1 %v184_v8, %s1032_s5 }
  0x3d   : > { %439 = vrot.lane.b32.xlu2 %v181_v5, %s1032_s5 }
  0x44   : > { %441 = vrot.lane.b32.xlu0 %v182_v9, %s1032_s5  ;;  %507 = vrot.lane.b32.xlu1 %v181_v5, %s1033_s6 }
  0x45   : > { %509 = vrot.lane.b32.xlu2 %v182_v9, %s1033_s6 }
  0x4c   : > { %575 = vrot.lane.b32.xlu0 %v181_v5, %s1034_s7  ;;  %577 = vrot.lane.b32.xlu1 %v182_v9, %s1034_s7 }
  0x4d   : > { %511 = vrot.lane.b32.xlu2 %v1111_v4, %s1033_s6 }
  0x54   : > { %513 = vrot.lane.b32.xlu0 %v184_v8, %s1033_s6  ;;  %579 = vrot.lane.b32.xlu1 %v1111_v4, %s1034_s7 }
  0x55   : > { %645 = vrot.lane.b32.xlu2 %v182_v9, %s1035_s8 }
  0x5c   : > { %647 = vrot.lane.b32.xlu0 %v1111_v4, %s1035_s8  ;;  %581 = vrot.lane.b32.xlu1 %v184_v8, %s1034_s7  ;;  %s985_s7 = scalar_lea.hbm %s1263_s3, 48 }
  0x5d   : > { %643 = vrot.lane.b32.xlu2 %v181_v5, %s1035_s8  ;;  %p987_p1 = scmp.lt.s32.totalorder %s985_s7, %s981_s4 }
  0x5f   : > { %p988_p2 = por %p987_p1, %p986_p0 }
  0x61   : > { %p989_p3 = pnand %p988_p2, %p984_p13 }
  0x64   : > { %649 = vrot.lane.b32.xlu0 %v184_v8, %s1035_s8  ;;  %715 = vrot.lane.b32.xlu1 %v1111_v4, %s1036_s9 }
  0x65   : > { %717 = vrot.lane.b32.xlu2 %v184_v8, %s1036_s9 }
  0x6c   : > { %713 = vrot.lane.b32.xlu1 %v182_v9, %s1036_s9  ;;  %711 = vrot.lane.b32.xlu0 %v181_v5, %s1036_s9  ;;  %v893_v5 = vld [vmem:[%s1261_s1 + $0x14] sm:$0xf] }
  0x77   : > { %v304_v12 = vpop.permute.xlu2 %303 }
  0x7f   : > { %v306_v13 = vpop.permute.xlu2 %305 }
  0x80   : > { %v312_v17 = vsel %vm311_vm2, %v304_v12, %v306_v13 }
  0x81   : > { %v319_v21 = vsel %vm201_vm0, %v312_v17, 0 }
  0x87   : > { %v376_v14 = vpop.permute.xlu2 %375 }
  0x8e   : > { %v190_v15 = vpop.permute.xlu0 %189  ;;  %v186_v16 = vpop.permute.xlu1 %185 }
  0x8f   : > { %v378_v18 = vpop.permute.xlu2 %377 }
  0x90   : > { %v382_v31 = vsel %vm379_vm4, %v376_v14, %v378_v18 }
  0x91   : > { %v393_v37 = vsel %vm201_vm0, %v382_v31, 0 }
  0x96   : > { %v192_v19 = vpop.permute.xlu0 %191  ;;  %v188_v20 = vpop.permute.xlu1 %187 }
  0x97   : > { %v194_v22 = vsel %vm193_vm3, %v186_v16, %v188_v20  ;;  %v195_v23 = vsel %vm193_vm3, %v188_v20, %v190_v15  ;;  %v196_v24 = vsel %vm193_vm3, %v190_v15, %v192_v19  ;;  %v440_v32 = vpop.permute.xlu2 %439 }
  0x98   : > { %v203_v26 = vsel %vm201_vm0, %v194_v22, 0  ;;  %v206_v27 = vsel %vm201_vm0, %v195_v23, 0  ;;  %v209_v28 = vsel %vm201_vm0, %v196_v24, 0  ;;  %v897_v22 = vld [vmem:[%s1261_s1 + $0x18] sm:$0xf] }
  0x99   : > { %218 = vmatpush.bf16.msra.mxu0 %v203_v26  ;;  %231 = vmatpush.bf16.msra.mxu1 %v206_v27 }
  0x9a   : > { %244 = vmatpush.bf16.msra.mxu2 %v209_v28 }
  0x9c   : > { %875 = vmatmul.msk.bf16.vlgmr.msra.gmra.mxu0 %vm197_vm1, %v874_v30  ;;  %876 = vmatmul.msk.bf16.vlgmr.msra.gmra.mxu1 %vm197_vm1, %v874_v30 }
  0x9d   : > { %282 = vmatpush.bf16.msrb.mxu0 %v257_v25  ;;  %295 = vmatpush.bf16.msrb.mxu1 %v260_v29 }
  0x9e   : > { %334 = vmatpush.bf16.msrb.mxu2 %v319_v21  ;;  %v308_v33 = vpop.permute.xlu0 %307  ;;  %v374_v34 = vpop.permute.xlu1 %373 }
  0x9f   : > { %877 = vmatmul.msk.bf16.vlgmr.msra.gmra.mxu2 %vm197_vm1, %v874_v30  ;;  %v381_v35 = vsel %vm379_vm4, %v374_v34, %v376_v14  ;;  %v313_v36 = vsel %vm311_vm2, %v306_v13, %v308_v33  ;;  %v510_v47 = vpop.permute.xlu2 %509  ;;  %v889_v14 = vld [vmem:[%s1261_s1 + $0x10] sm:$0xf] }
  0xa0   : > { %v390_v38 = vsel %vm201_vm0, %v381_v35, 0  ;;  %v322_v39 = vsel %vm201_vm0, %v313_v36, 0  ;;  %v901_v36 = vld [vmem:[%s1261_s1 + $0x1c] sm:$0xf] }
  0xa1   : > { %347 = vmatpush.bf16.msrb.mxu3 %v322_v39  ;;  %v777_v39 = vld [vmem:[%s1262_s2] sm:$0xff] }
  0xa2   : > { %415 = vmatpush.bf16.msra.mxu2 %v390_v38 }
  0xa3   : > { %v271_v38 = vpop.f32.mrf.mxu3 }
  0xa4   : > { %883 = vmatmul.msk.bf16.vlgmr.msrb.gmra.mxu3 %vm197_vm1, %v881_v40 }
  0xa5   : > { %428 = vmatpush.bf16.msra.mxu3 %v393_v37  ;;  %v905_v37 = vld [vmem:[%s1261_s1 + $0x20] sm:$0xf] }
  0xa6   : > { %v310_v41 = vpop.permute.xlu0 %309  ;;  %v372_v42 = vpop.permute.xlu1 %371 }
  0xa7   : > { %v314_v43 = vsel %vm311_vm2, %v308_v33, %v310_v41  ;;  %v380_v44 = vsel %vm379_vm4, %v372_v42, %v374_v34  ;;  %v512_v52 = vpop.permute.xlu2 %511 }
  0xa8   : > { %v325_v45 = vsel %vm201_vm0, %v314_v43, 0  ;;  %v387_v46 = vsel %vm201_vm0, %v380_v44, 0  ;;  %v517_v59 = vsel %vm515_vm6, %v510_v47, %v512_v52 }
  0xa9   : > { %360 = vmatpush.bf16.msra.mxu0 %v325_v45  ;;  %402 = vmatpush.bf16.msra.mxu1 %v387_v46  ;;  %v526_v63 = vsel %vm201_vm0, %v517_v59, 0 }
  0xab   : > { %v273_v41 = vpop.f32.mrf.mxu3 }
  0xac   : > { %879 = vmatmul.msk.bf16.vlgmr.msrb.gmra.mxu0 %vm197_vm1, %v172_v11  ;;  %880 = vmatmul.msk.bf16.vlgmr.msrb.gmra.mxu1 %vm197_vm1, %v172_v11 }
  0xae   : > { %v444_v48 = vpop.permute.xlu0 %443  ;;  %v446_v49 = vpop.permute.xlu1 %445 }
  0xaf   : > { %882 = vmatmul.msk.bf16.vlgmr.msrb.gmra.mxu2 %vm197_vm1, %v881_v40  ;;  %v450_v50 = vsel %vm447_vm5, %v444_v48, %v446_v49  ;;  %v646_v0 = vpop.permute.xlu2 %645 }
  0xb0   : > { %v461_v51 = vsel %vm201_vm0, %v450_v50, 0 }
  0xb1   : > { %496 = vmatpush.bf16.msrb.mxu2 %v461_v51 }
  0xb4   : > { %888 = vmatmul.msk.bf16.vlgmr.msra.gmra.mxu3 %vm197_vm1, %v885_v53 }
  0xb6   : > { %v442_v54 = vpop.permute.xlu0 %441  ;;  %v508_v55 = vpop.permute.xlu1 %507 }
  0xb7   : > { %v449_v56 = vsel %vm447_vm5, %v442_v54, %v444_v48  ;;  %v448_v57 = vsel %vm447_vm5, %v440_v32, %v442_v54  ;;  %v516_v58 = vsel %vm515_vm6, %v508_v55, %v510_v47  ;;  %v644_v6 = vpop.permute.xlu2 %643 }
  0xb8   : > { %v458_v60 = vsel %vm201_vm0, %v449_v56, 0  ;;  %v455_v61 = vsel %vm201_vm0, %v448_v57, 0  ;;  %v523_v62 = vsel %vm201_vm0, %v516_v58, 0  ;;  %v652_v11 = vsel %vm651_vm8, %v644_v6, %v646_v0 }
  0xb9   : > { %483 = vmatpush.bf16.msrb.mxu1 %v458_v60  ;;  %470 = vmatpush.bf16.msrb.mxu0 %v455_v61  ;;  %v659_v15 = vsel %vm201_vm0, %v652_v11, 0 }
  0xba   : > { %538 = vmatpush.bf16.msrb.mxu3 %v523_v62 }
  0xbc   : > { %884 = vmatmul.msk.bf16.vlgmr.msra.gmra.mxu0 %vm197_vm1, %v881_v40  ;;  %886 = vmatmul.msk.bf16.vlgmr.msra.gmra.mxu1 %vm197_vm1, %v885_v53  ;;  %v1037_v40 = vmov 0  }
  0xbd   : > { %551 = vmatpush.bf16.msra.mxu0 %v526_v63  ;;  %963 = vset.pattern.permute.xlu2 %v1037_v40 }
  0xbe   : > { %v576_v1 = vpop.permute.xlu0 %575  ;;  %v578_v2 = vpop.permute.xlu1 %577  ;;  %964 = vset.pattern.permute.xlu0 %v1037_v40  ;;  %780 = vperm.xlu2 %963, %v777_v39  }
  0xbf   : > { %887 = vmatmul.msk.bf16.vlgmr.msra.gmra.mxu2 %vm197_vm1, %v885_v53  ;;  %v584_v3 = vsel %vm583_vm7, %v576_v1, %v578_v2  ;;  %v718_v23 = vpop.permute.xlu2 %717 }
  0xc0   : > { %v591_v4 = vsel %vm201_vm0, %v584_v3, 0 }
  0xc1   : > { %606 = vmatpush.bf16.msra.mxu2 %v591_v4 }
  0xc4   : > { %894 = vmatmul.msk.bf16.vlgmr.msrb.gmra.mxu3 %vm197_vm1, %v893_v5 }
  0xc6   : > { %v514_v7 = vpop.permute.xlu0 %513  ;;  %v580_v8 = vpop.permute.xlu1 %579 }
  0xc7   : > { %v518_v9 = vsel %vm515_vm6, %v512_v52, %v514_v7  ;;  %v585_v10 = vsel %vm583_vm7, %v578_v2, %v580_v8 }
  0xc8   : > { %v529_v12 = vsel %vm201_vm0, %v518_v9, 0  ;;  %v594_v13 = vsel %vm201_vm0, %v585_v10, 0 }
  0xc9   : > { %619 = vmatpush.bf16.msra.mxu3 %v594_v13  ;;  %564 = vmatpush.bf16.msra.mxu1 %v529_v12 }
  0xcc   : > { %890 = vmatmul.msk.bf16.vlgmr.msrb.gmra.mxu0 %vm197_vm1, %v889_v14  ;;  %891 = vmatmul.msk.bf16.vlgmr.msrb.gmra.mxu1 %vm197_vm1, %v889_v14 }
  0xcd   : > { %674 = vmatpush.bf16.msrb.mxu1 %v659_v15 }
  0xce   : > { %v648_v16 = vpop.permute.xlu0 %647  ;;  %v582_v17 = vpop.permute.xlu1 %581 }
  0xcf   : > { %892 = vmatmul.msk.bf16.vlgmr.msrb.gmra.mxu2 %vm197_vm1, %v889_v14  ;;  %v653_v18 = vsel %vm651_vm8, %v646_v0, %v648_v16  ;;  %v586_v19 = vsel %vm583_vm7, %v580_v8, %v582_v17 }
  0xd0   : > { %v662_v20 = vsel %vm201_vm0, %v653_v18, 0  ;;  %v597_v21 = vsel %vm201_vm0, %v586_v19, 0 }
  0xd1   : > { %632 = vmatpush.bf16.msrb.mxu0 %v597_v21  ;;  %687 = vmatpush.bf16.msrb.mxu2 %v662_v20 }
  0xd4   : > { %899 = vmatmul.msk.bf16.vlgmr.msra.gmra.mxu3 %vm197_vm1, %v897_v22 }
  0xd6   : > { %v650_v24 = vpop.permute.xlu0 %649  ;;  %v716_v25 = vpop.permute.xlu1 %715 }
  0xd7   : > { %v654_v26 = vsel %vm651_vm8, %v648_v16, %v650_v24  ;;  %v722_v28 = vsel %vm719_vm9, %v716_v25, %v718_v23 }
  0xd8   : > { %v665_v27 = vsel %vm201_vm0, %v654_v26, 0  ;;  %v733_v29 = vsel %vm201_vm0, %v722_v28, 0 }
  0xd9   : > { %700 = vmatpush.bf16.msrb.mxu3 %v665_v27 }
  0xdc   : > { %895 = vmatmul.msk.bf16.vlgmr.msra.gmra.mxu0 %vm197_vm1, %v893_v5  ;;  %896 = vmatmul.msk.bf16.vlgmr.msra.gmra.mxu1 %vm197_vm1, %v893_v5 }
  0xde   : > { %v714_v30 = vpop.permute.xlu1 %713  ;;  %v712_v31 = vpop.permute.xlu0 %711 }
  0xdf   : > { %898 = vmatmul.msk.bf16.vlgmr.msra.gmra.mxu2 %vm197_vm1, %v897_v22  ;;  %v721_v32 = vsel %vm719_vm9, %v714_v30, %v716_v25  ;;  %v720_v33 = vsel %vm719_vm9, %v712_v31, %v714_v30 }
  0xe0   : > { %768 = vmatpush.bf16.msra.mxu2 %v733_v29  ;;  %v730_v34 = vsel %vm201_vm0, %v721_v32, 0  ;;  %v727_v35 = vsel %vm201_vm0, %v720_v33, 0 }
  0xe1   : > { %755 = vmatpush.bf16.msra.mxu1 %v730_v34  ;;  %742 = vmatpush.bf16.msra.mxu0 %v727_v35 }
  0xe4   : > { %904 = vmatmul.msk.bf16.vlgmr.msrb.gmra.mxu3 %vm197_vm1, %v901_v36 }
  0xec   : > { %900 = vmatmul.msk.bf16.vlgmr.msrb.gmra.mxu0 %vm197_vm1, %v897_v22  ;;  %902 = vmatmul.msk.bf16.vlgmr.msrb.gmra.mxu1 %vm197_vm1, %v901_v36 }
  0xef   : > { %903 = vmatmul.msk.bf16.vlgmr.msrb.gmra.mxu2 %vm197_vm1, %v901_v36 }
  0xfc   : > { %906 = vmatmul.msk.bf16.vlgmr.msra.gmra.mxu0 %vm197_vm1, %v905_v37  ;;  %907 = vmatmul.msk.bf16.vlgmr.msra.gmra.mxu1 %vm197_vm1, %v905_v37 }
  0xff   : > { %908 = vmatmul.msk.bf16.vlgmr.msra.gmra.mxu2 %vm197_vm1, %v905_v37 }
 0x119   : > { %v220_v42 = vpop.f32.mrf.mxu0  ;;  %v233_v43 = vpop.f32.mrf.mxu1 }
 0x11a   : > { %v272_v44 = vadd.f32 %v271_v38, %v220_v42  ;;  %v781_v42 = vpop.permute.xlu2 %780 }
 0x121   : > { %v222_v46 = vpop.f32.mrf.mxu0  ;;  %v235_v47 = vpop.f32.mrf.mxu1 }
 0x122   : > { %v246_v45 = vpop.f32.mrf.mxu2 }
 0x127   : > { %v349_v48 = vpop.f32.mrf.mxu3 }
 0x129   : > { %v284_v50 = vpop.f32.mrf.mxu0  ;;  %v297_v51 = vpop.f32.mrf.mxu1 }
 0x12a   : > { %v248_v49 = vpop.f32.mrf.mxu2  ;;  %v285_v52 = vadd.f32 %v284_v50, %v233_v43  ;;  %v298_v53 = vadd.f32 %v297_v51, %v246_v45 }
 0x12c   : > { %v367_v54 = vadd.f32 %v349_v48, %v285_v52 }
 0x12f   : > { %v351_v55 = vpop.f32.mrf.mxu3 }
 0x131   : > { %v286_v57 = vpop.f32.mrf.mxu0  ;;  %v299_v58 = vpop.f32.mrf.mxu1 }
 0x132   : > { %v336_v56 = vpop.f32.mrf.mxu2 }
 0x133   : > { %v366_v23 = vadd.f32 %v336_v56, %v272_v44 }
 0x137   : > { %v430_v59 = vpop.f32.mrf.mxu3 }
 0x139   : > { %v362_v61 = vpop.f32.mrf.mxu0  ;;  %v404_v62 = vpop.f32.mrf.mxu1 }
 0x13a   : > { %v338_v60 = vpop.f32.mrf.mxu2  ;;  %v434_v24 = vadd.f32 %v404_v62, %v366_v23  ;;  %v368_v30 = vadd.f32 %v362_v61, %v298_v53 }
 0x13c   : > { %v436_v35 = vadd.f32 %v430_v59, %v368_v30 }
 0x13f   : > { %v432_v63 = vpop.f32.mrf.mxu3 }
 0x141   : > { %v364_v1 = vpop.f32.mrf.mxu0  ;;  %v406_v2 = vpop.f32.mrf.mxu1 }
 0x142   : > { %v417_v0 = vpop.f32.mrf.mxu2 }
 0x143   : > { %v435_v25 = vadd.f32 %v417_v0, %v367_v54 }
 0x147   : > { %v540_v3 = vpop.f32.mrf.mxu3 }
 0x149   : > { %v472_v5 = vpop.f32.mrf.mxu0  ;;  %v485_v6 = vpop.f32.mrf.mxu1 }
 0x14a   : > { %v419_v4 = vpop.f32.mrf.mxu2  ;;  %v502_v27 = vadd.f32 %v472_v5, %v434_v24  ;;  %v503_v28 = vadd.f32 %v485_v6, %v435_v25 }
 0x14c   : > { %v570_v34 = vadd.f32 %v540_v3, %v502_v27 }
 0x14f   : > { %v542_v7 = vpop.f32.mrf.mxu3 }
 0x151   : > { %v474_v9 = vpop.f32.mrf.mxu0  ;;  %v487_v10 = vpop.f32.mrf.mxu1 }
 0x152   : > { %v498_v8 = vpop.f32.mrf.mxu2 }
 0x153   : > { %v504_v38 = vadd.f32 %v498_v8, %v436_v35 }
 0x157   : > { %v621_v11 = vpop.f32.mrf.mxu3 }
 0x159   : > { %v553_v13 = vpop.f32.mrf.mxu0  ;;  %v566_v14 = vpop.f32.mrf.mxu1 }
 0x15a   : > { %v500_v12 = vpop.f32.mrf.mxu2  ;;  %v571_v33 = vadd.f32 %v553_v13, %v503_v28  ;;  %v572_v43 = vadd.f32 %v566_v14, %v504_v38 }
 0x15c   : > { %v639_v36 = vadd.f32 %v621_v11, %v571_v33 }
 0x15f   : > { %v623_v15 = vpop.f32.mrf.mxu3 }
 0x161   : > { %v555_v17 = vpop.f32.mrf.mxu0  ;;  %v568_v18 = vpop.f32.mrf.mxu1 }
 0x162   : > { %v608_v16 = vpop.f32.mrf.mxu2 }
 0x163   : > { %v638_v37 = vadd.f32 %v608_v16, %v570_v34 }
 0x167   : > { %v702_v19 = vpop.f32.mrf.mxu3 }
 0x169   : > { %v634_v21 = vpop.f32.mrf.mxu0  ;;  %v676_v22 = vpop.f32.mrf.mxu1 }
 0x16a   : > { %v610_v20 = vpop.f32.mrf.mxu2  ;;  %v706_v39 = vadd.f32 %v676_v22, %v638_v37  ;;  %v640_v48 = vadd.f32 %v634_v21, %v572_v43 }
 0x16c   : > { %v708_v53 = vadd.f32 %v702_v19, %v640_v48 }
 0x16f   : > { %v704_v26 = vpop.f32.mrf.mxu3 }
 0x171   : > { %v636_v31 = vpop.f32.mrf.mxu0  ;;  %v678_v32 = vpop.f32.mrf.mxu1 }
 0x172   : > { %v689_v29 = vpop.f32.mrf.mxu2 }
 0x173   : > { %v707_v40 = vadd.f32 %v689_v29, %v639_v36 }
 0x179   : > { %v744_v44 = vpop.f32.mrf.mxu0  ;;  %v757_v45 = vpop.f32.mrf.mxu1 }
 0x17a   : > { %v691_v41 = vpop.f32.mrf.mxu2  ;;  %v774_v46 = vadd.f32 %v744_v44, %v706_v39  ;;  %v775_v47 = vadd.f32 %v757_v45, %v707_v40 }
 0x17c   : > { %v783_v49 = vadd.f32 %v781_v42, %v774_v46  ;;  %v784_v50 = vadd.f32 %v781_v42, %v775_v47 }
 0x17e   : > { %v786_v51 = vmax.f32 %v783_v49, 0.0  ;;  %v787_v52 = vmax.f32 %v784_v50, 0.0 }
 0x180   : > { %789 = vst [vmem:[%s163_s27] sm:$0xff] %v786_v51 }
 0x181   : > { %790 = vst [vmem:[%s163_s27 + $0x8] sm:$0xff] %v787_v52  ;;  %v746_v56 = vpop.f32.mrf.mxu0  ;;  %v759_v57 = vpop.f32.mrf.mxu1 }
 0x182   : > { %v770_v54 = vpop.f32.mrf.mxu2 }
 0x183   : > { %v776_v55 = vadd.f32 %v770_v54, %v708_v53 }
 0x185   : > { %v785_v58 = vadd.f32 %v781_v42, %v776_v55 }
 0x187   : > { %v788_v59 = vmax.f32 %v785_v58, 0.0 }
 0x189   : > { %791 = vst [vmem:[%s163_s27 + $0x10] sm:$0xff] %v788_v59 }
 0x18a   : > { %v772_v60 = vpop.f32.mrf.mxu2 }
 0x18b   : > { %992 = shalt.err (!%p989_p3)
}
 0x18c   : > { %915 = dma.vmem_to_hbm [thread:$0]  (%p1096_p5), %s807_s28, 384, %s809_s16, %s793_s29  }
 0x18d PF: > { %p921_p4 = scmp.ge.s32.totalorder %s1027_s15, 2  ;;  %s820_s10 = sand.u32 1, %s1015_s12  }
 0x18e   : > { %s821_s11 = scalar_lea.sflag [#allocation3], %s820_s10 }
 0x18f   : > { %p918_p7 = pnand %p921_p4, %p1100_p6 }
 0x191   : > { %p919_p8 = pneg %p918_p7 }
 0x193   : > { %1010 = dma.done.wait (%p919_p8), %s821_s11, 384  }
 0x194   : > { %1012 = vsyncadd (%p919_p8), %s821_s11, 4294966912  ;;  %p13_p9 = scmp.ge.s32.totalorder %s1083_s18, 4   ;;  %s1266_s12 = smov %s1019_s13 }
 0x195   : > { %s1267_s13 = smov %s1023_s14  ;;  %s1268_s14 = smov %s1094_s21 }
 0x196   : > { %s1269_s15 = smov %s1083_s18  ;;  %15 = sbr.rel (!%p13_p9) target bundleno = 3 (0x3), region = 75 }
 0x19b   :  { %827 = vsyncpa [#allocation3], 1 }
 0x19c   :  { %829 = vsyncpa [#allocation3 + $0x1], 1 }

</bundles_post_ra>
